<compile_context>
chip_gen: v7x
topology: tpu7x:2x2x1
jax: 0.10.0
libtpu: 0.0.40
codegen_flags: <defaults>
</compile_context>

<pallas_src>
import functools
import math

import jax
import jax.numpy as jnp
from jax import lax
from jax.experimental import pallas as pl
from jax.experimental.pallas import tpu as pltpu


def _sgcn_kernel(*refs, k_hops, in_valid, layer_norm_first, project_first):
    """Fused SGCN forward on one VMEM-resident block.

    refs = (x, adj, w, b[, ln_w, ln_b], out); feature/class axes padded to 128.
    x is f32 zero-padded past in_valid; adj is bf16, symmetric, no self loops;
    b holds -1e30 in padded class columns.
    """
    if layer_norm_first:
        x_ref, a_ref, w_ref, b_ref, lnw_ref, lnb_ref, o_ref = refs
    else:
        x_ref, a_ref, w_ref, b_ref, o_ref = refs
        lnw_ref = lnb_ref = None

    x = x_ref[...]                      # [N, FP] f32
    a = a_ref[...]                      # [N, N ] bf16

    if layer_norm_first:
        # Padded feature lanes of x are exactly 0 and ln_w/ln_b pad to 0, so
        # no iota mask is needed: padded lanes map back to 0 after LN.
        cnt = jnp.float32(in_valid)
        mean = jnp.sum(x, axis=-1, keepdims=True) / cnt
        var = jnp.sum(x * x, axis=-1, keepdims=True) / cnt - mean * mean
        x = (x - mean) * lax.rsqrt(var + 1e-5) * lnw_ref[...] + lnb_ref[...]

    # gcn_norm (add_self_loops=True) WITHOUT materializing A_hat:
    #   deg_i = 1 + sum_j A[i, j]   (f32 accumulation over the bf16 adjacency)
    deg = jnp.sum(a, axis=-1, keepdims=True, dtype=jnp.float32) + 1.0
    dinv = lax.rsqrt(deg)               # D^{-1/2}; deg >= 1 always (EUP slot)

    w = w_ref[...]
    if project_first:
        # SGConv is linear: Linear(S^K x) == S^K (x W) + b.  Project to the
        # (usually narrower) class width first and propagate on [N, OP].
        h = jnp.dot(x.astype(jnp.bfloat16), w.astype(jnp.bfloat16),
                    preferred_element_type=jnp.float32)
    else:
        h = x

    # K hops:  S h = dinv * (A_hat @ (dinv h)) = dinv * (A @ (dinv h) + dinv h)
    for _ in range(k_hops):              # K is small and static
        hs = dinv * h
        h = dinv * (jnp.dot(a, hs.astype(jnp.bfloat16),
                            preferred_element_type=jnp.float32) + hs)

    if not project_first:
        h = jnp.dot(h.astype(jnp.bfloat16), w.astype(jnp.bfloat16),
                    preferred_element_type=jnp.float32)

    # Bias: real class columns hold b, padded columns hold -1e30, so the padded
    # lanes vanish from the softmax with no mask and exp() cannot overflow.
    logits = h + b_ref[...]

    m = jnp.max(logits, axis=-1, keepdims=True)
    z = logits - m
    sumexp = jnp.sum(jnp.exp(z), axis=-1, keepdims=True)
    o_ref[...] = z - jnp.log(sumexp)     # lane-dense [N, OP] store


def _round_up(v, m):
    return ((v + m - 1) // m) * m


def _pad2d(arr, rows, cols):
    r, c = arr.shape
    return jnp.pad(arr, ((0, rows - r), (0, cols - c)))


def sgcn_forward(x, adj, w, b, ln_w=None, ln_b=None, *,
                 k_hops, layer_norm_first=False):
    """Dense SGCN forward.  x: [N, in_c], adj: [N, N] symmetric, w: [in_c, out_c]."""
    n, in_c = x.shape
    out_c = w.shape[1]
    lane = 128
    fp = _round_up(in_c, lane)
    op = _round_up(out_c, lane)
    project_first = op <= fp             # linearity: S^K(xW) == (S^K x)W

    x_p = _pad2d(x.astype(jnp.float32), n, fp)
    w_p = _pad2d(w.astype(jnp.float32), fp, op)
    # Bias padded with -1e30 in the fake class columns -> no softmax mask needed.
    b_p = jnp.full((1, op), -1e30, jnp.float32).at[0, :out_c].set(
        b.astype(jnp.float32))
    # bf16 adjacency: exact for 0/1 edge weights, halves DMA + VMEM residency.
    # TODO(synk): for weighted graphs, validate bf16 edge-weight precision.
    a_bf = adj.astype(jnp.bfloat16)

    vspec = pl.BlockSpec(memory_space=pltpu.MemorySpace.VMEM)
    operands = [x_p, a_bf, w_p, b_p]
    in_specs = [vspec, vspec, vspec, vspec]
    if layer_norm_first:
        operands += [_pad2d(ln_w.astype(jnp.float32).reshape(1, in_c), 1, fp),
                     _pad2d(ln_b.astype(jnp.float32).reshape(1, in_c), 1, fp)]
        in_specs += [vspec, vspec]

    # Advisory cost + explicit VMEM sizing (defaults: 16 MiB v5e / 32 MiB v6e,v7x).
    prop_w = op if project_first else fp
    flops = int(2 * k_hops * n * n * prop_w + 2 * n * fp * op)
    bytes_accessed = int(n * n * 2 + n * fp * 4 + fp * op * 4 + op * 4 + n * op * 4)
    transcendentals = int(n * (op + 2))  # exp row + rsqrt + log per node
    vmem_bytes = (n * n * 2                       # bf16 adjacency
                  + 4 * (2 * n * fp + fp * op + 6 * n * op)   # f32 working set
                  + (2 << 20))                    # headroom
    vmem_limit = int(min(max(vmem_bytes, 32 << 20), 64 << 20))

    kern = functools.partial(_sgcn_kernel, k_hops=k_hops, in_valid=in_c,
                             layer_norm_first=layer_norm_first,
                             project_first=project_first)
    out = pl.pallas_call(
        kern,
        out_shape=jax.ShapeDtypeStruct((n, op), jnp.float32),
        in_specs=in_specs,
        out_specs=vspec,
        compiler_params=pltpu.CompilerParams(vmem_limit_bytes=vmem_limit),
        cost_estimate=pl.CostEstimate(flops=flops,
                                      transcendentals=transcendentals,
                                      bytes_accessed=bytes_accessed),
    )(*operands)
    return out[:, :out_c]


if __name__ == "__main__":
    # Shapes consistent with SGCN(in_channels=32, hidden_channels=32,
    # out_channels=16, num_layers=3, dropout=0.5).  hidden_channels / dropout /
    # use_ln do not affect SGCN.forward (faithful to the reference).
    N, IN_C, OUT_C, NUM_LAYERS = 128, 32, 16, 3

    k_x, k_a, k_w, k_b = jax.random.split(jax.random.PRNGKey(0), 4)

    # node features [N, IN_C]
    x = jax.random.normal(k_x, (N, IN_C), jnp.float32)

    # random symmetric adjacency, no self loops (dense stand-in for adj_t)
    u = (jax.random.uniform(k_a, (N, N)) < 0.05).astype(jnp.float32)
    upper = jnp.triu(u, k=1)
    adj = ((upper + upper.T) > 0).astype(jnp.float32)

    # SGConv.lin = Linear(IN_C, OUT_C), glorot-uniform weight + small bias
    limit = math.sqrt(6.0 / (IN_C + OUT_C))
    w = jax.random.uniform(k_w, (IN_C, OUT_C), jnp.float32, -limit, limit)
    b = 0.1 * jax.random.normal(k_b, (OUT_C,), jnp.float32)

    fwd = jax.jit(functools.partial(sgcn_forward, k_hops=NUM_LAYERS,
                                    layer_norm_first=False))
    out = jax.block_until_ready(fwd(x, adj, w, b))

    assert out.shape == (N, OUT_C), out.shape
    assert bool(jnp.all(jnp.isfinite(out)))
    # rows of exp(log_softmax) must sum to 1
    row_sums = jnp.sum(jnp.exp(out), axis=-1)
    assert bool(jnp.all(jnp.abs(row_sums - 1.0) < 1e-3))
    print("KERNEL_OK")
</pallas_src>

<mosaic_0001>
module attributes {stable_mosaic.version = 11 : i64} {
  func.func @_sgcn_kernel(%arg0: memref<128x128xf32, #tpu.memory_space<vmem>>, %arg1: memref<128x128xbf16, #tpu.memory_space<vmem>>, %arg2: memref<128x128xf32, #tpu.memory_space<vmem>>, %arg3: memref<1x128xf32, #tpu.memory_space<vmem>>, %arg4: memref<128x128xf32, #tpu.memory_space<vmem>>) attributes {dimension_semantics = [], scalar_prefetch = 0 : i64, scratch_operands = 0 : i64, tpu.core_type = #tpu.core_type<tc>} {
    %c0 = arith.constant 0 : index
    %c0_0 = arith.constant 0 : index
    %0 = vector.load %arg0[%c0, %c0_0] : memref<128x128xf32, #tpu.memory_space<vmem>>, vector<128x128xf32>
    %c0_1 = arith.constant 0 : index
    %c0_2 = arith.constant 0 : index
    %1 = vector.load %arg1[%c0_1, %c0_2] : memref<128x128xbf16, #tpu.memory_space<vmem>>, vector<128x128xbf16>
    %2 = arith.extf %1 : vector<128x128xbf16> to vector<128x128xf32>
    %cst = arith.constant dense<0.000000e+00> : vector<128xf32>
    %3 = vector.multi_reduction <add>, %2, %cst [1] : vector<128x128xf32> to vector<128xf32>
    %4 = vector.shape_cast %3 : vector<128xf32> to vector<128x1xf32>
    %cst_3 = arith.constant 1.000000e+00 : f32
    %5 = vector.broadcast %cst_3 : f32 to vector<128x1xf32>
    %6 = arith.addf %4, %5 : vector<128x1xf32>
    %7 = math.rsqrt %6 : vector<128x1xf32>
    %c0_4 = arith.constant 0 : index
    %c0_5 = arith.constant 0 : index
    %8 = vector.load %arg2[%c0_4, %c0_5] : memref<128x128xf32, #tpu.memory_space<vmem>>, vector<128x128xf32>
    %9 = arith.truncf %0 : vector<128x128xf32> to vector<128x128xbf16>
    %10 = arith.truncf %8 : vector<128x128xf32> to vector<128x128xbf16>
    %cst_6 = arith.constant dense<0.000000e+00> : vector<128x128xf32>
    %11 = tpu.matmul %9, %10, %cst_6 {dimension_numbers = #tpu.dot_dimension_numbers<[1], [0], [0], [1], [0, 0, 1, 1], [], []>} : vector<128x128xbf16>, vector<128x128xbf16>, vector<128x128xf32> -> vector<128x128xf32>
    %12 = vector.broadcast %7 : vector<128x1xf32> to vector<128x128xf32>
    %13 = arith.mulf %12, %11 : vector<128x128xf32>
    %14 = arith.truncf %13 : vector<128x128xf32> to vector<128x128xbf16>
    %cst_7 = arith.constant dense<0.000000e+00> : vector<128x128xf32>
    %15 = tpu.matmul %1, %14, %cst_7 {dimension_numbers = #tpu.dot_dimension_numbers<[1], [0], [0], [1], [0, 0, 1, 1], [], []>} : vector<128x128xbf16>, vector<128x128xbf16>, vector<128x128xf32> -> vector<128x128xf32>
    %16 = arith.addf %15, %13 : vector<128x128xf32>
    %17 = vector.broadcast %7 : vector<128x1xf32> to vector<128x128xf32>
    %18 = arith.mulf %17, %16 : vector<128x128xf32>
    %19 = vector.broadcast %7 : vector<128x1xf32> to vector<128x128xf32>
    %20 = arith.mulf %19, %18 : vector<128x128xf32>
    %21 = arith.truncf %20 : vector<128x128xf32> to vector<128x128xbf16>
    %cst_8 = arith.constant dense<0.000000e+00> : vector<128x128xf32>
    %22 = tpu.matmul %1, %21, %cst_8 {dimension_numbers = #tpu.dot_dimension_numbers<[1], [0], [0], [1], [0, 0, 1, 1], [], []>} : vector<128x128xbf16>, vector<128x128xbf16>, vector<128x128xf32> -> vector<128x128xf32>
    %23 = arith.addf %22, %20 : vector<128x128xf32>
    %24 = vector.broadcast %7 : vector<128x1xf32> to vector<128x128xf32>
    %25 = arith.mulf %24, %23 : vector<128x128xf32>
    %26 = vector.broadcast %7 : vector<128x1xf32> to vector<128x128xf32>
    %27 = arith.mulf %26, %25 : vector<128x128xf32>
    %28 = arith.truncf %27 : vector<128x128xf32> to vector<128x128xbf16>
    %cst_9 = arith.constant dense<0.000000e+00> : vector<128x128xf32>
    %29 = tpu.matmul %1, %28, %cst_9 {dimension_numbers = #tpu.dot_dimension_numbers<[1], [0], [0], [1], [0, 0, 1, 1], [], []>} : vector<128x128xbf16>, vector<128x128xbf16>, vector<128x128xf32> -> vector<128x128xf32>
    %30 = arith.addf %29, %27 : vector<128x128xf32>
    %31 = vector.broadcast %7 : vector<128x1xf32> to vector<128x128xf32>
    %32 = arith.mulf %31, %30 : vector<128x128xf32>
    %c0_10 = arith.constant 0 : index
    %c0_11 = arith.constant 0 : index
    %33 = vector.load %arg3[%c0_10, %c0_11] : memref<1x128xf32, #tpu.memory_space<vmem>>, vector<1x128xf32>
    %34 = vector.broadcast %33 : vector<1x128xf32> to vector<128x128xf32>
    %35 = arith.addf %32, %34 : vector<128x128xf32>
    %cst_12 = arith.constant dense<0xFF800000> : vector<128xf32>
    %36 = vector.multi_reduction <maximumf>, %35, %cst_12 [1] : vector<128x128xf32> to vector<128xf32>
    %37 = vector.shape_cast %36 : vector<128xf32> to vector<128x1xf32>
    %38 = vector.broadcast %37 : vector<128x1xf32> to vector<128x128xf32>
    %39 = arith.subf %35, %38 : vector<128x128xf32>
    %40 = math.exp %39 : vector<128x128xf32>
    %cst_13 = arith.constant dense<0.000000e+00> : vector<128xf32>
    %41 = vector.multi_reduction <add>, %40, %cst_13 [1] : vector<128x128xf32> to vector<128xf32>
    %42 = vector.shape_cast %41 : vector<128xf32> to vector<128x1xf32>
    %43 = math.log %42 : vector<128x1xf32>
    %44 = vector.broadcast %43 : vector<128x1xf32> to vector<128x128xf32>
    %45 = arith.subf %39, %44 : vector<128x128xf32>
    %c0_14 = arith.constant 0 : index
    %c0_15 = arith.constant 0 : index
    %46 = vector.load %arg4[%c0_14, %c0_15] : memref<128x128xf32, #tpu.memory_space<vmem>>, vector<128x128xf32>
    tpu.vector_store %arg4[%c0_14, %c0_15], %45 {strides = array<i32>} : memref<128x128xf32, #tpu.memory_space<vmem>>, vector<128x128xf32>,
    return
  }
}

</mosaic_0001>

<bundles_post_ra>
// kernel: sgcn_forward.1
= control target key start
LH: loop header
LB: loop body
LE: loop exit
PB: predicated region body
PF: predicated region fallthrough
CT: control target
= control target key end

     0   :  { %s1952_s2 = inlined_call_operand.vmem [shape: f32[128,128], index: 2, kind: input, shape index: {}]   ;;  %s1953_s0 = inlined_call_operand.vmem [shape: f32[128,128], index: 0, kind: input, shape index: {}]   ;;  %s1954_s1 = inlined_call_operand.vmem [shape: bf16[128,128], index: 1, kind: input, shape index: {}]   ;;  %s1955_s3 = inlined_call_operand.vmem [shape: f32[1,128], index: 3, kind: input, shape index: {}]   ;;  %s1956_s4 = inlined_call_operand.vmem [shape: f32[128,128], index: 4, kind: output, shape index: {}]  }
   0x1   :  { %v130_v0 = vld [vmem:[%s1952_s2] sm:$0xff]  ;;  %v131_v1 = vld [vmem:[%s1952_s2 + $0x8] sm:$0xff]  ;;  %v132_v2 = vld [vmem:[%s1952_s2 + $0x10] sm:$0xff] }
   0x2   :  { %v154_v3 = vpack.c.bf16 %v131_v1, %v130_v0  ;;  %v133_v4 = vld [vmem:[%s1952_s2 + $0x18] sm:$0xff]  ;;  %v134_v6 = vld [vmem:[%s1952_s2 + $0x20] sm:$0xff]  ;;  %v135_v7 = vld [vmem:[%s1952_s2 + $0x28] sm:$0xff] }
   0x3   :  { %v155_v5 = vpack.c.bf16 %v133_v4, %v132_v2  ;;  %v156_v8 = vpack.c.bf16 %v135_v7, %v134_v6  ;;  %v18_v9 = vld [vmem:[%s1953_s0] sm:$0xff]  ;;  %v19_v10 = vld [vmem:[%s1953_s0 + $0x8] sm:$0xff]  ;;  %v136_v11 = vld [vmem:[%s1952_s2 + $0x30] sm:$0xff] }
   0x4   :  { %994 = vmatprep.subr.bf16.mxu0 %v154_v3  ;;  %v137_v12 = vld [vmem:[%s1952_s2 + $0x38] sm:$0xff]  ;;  %v146_v13 = vpack.c.bf16 %v19_v10, %v18_v9  ;;  %v138_v15 = vld [vmem:[%s1952_s2 + $0x40] sm:$0xff]  ;;  %v139_v16 = vld [vmem:[%s1952_s2 + $0x48] sm:$0xff] }
   0x5   :  { %995 = vmatpush3.bf16.msra.mxu0 %v154_v3  ;;  %v157_v14 = vpack.c.bf16 %v137_v12, %v136_v11  ;;  %v1298_v17 = vld [vmem:[%s1954_s1] sm:$0xff]   ;;  %v1304_v19 = vld [vmem:[%s1954_s1 + $0x8] sm:$0xff]   ;;  %v158_v21 = vpack.c.bf16 %v139_v16, %v138_v15  ;;  %v140_v23 = vld [vmem:[%s1952_s2 + $0x50] sm:$0xff] }
   0x6   :  { %996 = vmatprep.subr.bf16.mxu0 %v155_v5  ;;  %1010 = vmatprep.mubr.bf16.mxu0 %v146_v13  ;;  %v50_v18 = vunpack.c.l.bf16 %v1298_v17  ;;  %v52_v20 = vunpack.c.l.bf16 %v1304_v19  ;;  %v51_v22 = vunpack.c.h.bf16 %v1298_v17  ;;  %v141_v24 = vld [vmem:[%s1952_s2 + $0x58] sm:$0xff]  ;;  %v53_v25 = vunpack.c.h.bf16 %v1304_v19  ;;  %v1318_v26 = vld [vmem:[%s1954_s1 + $0x10] sm:$0xff]   ;;  %v142_v29 = vld [vmem:[%s1952_s2 + $0x60] sm:$0xff] }
   0x7   :  { %1042 = vmatprep.mubr.bf16.mxu1 %v1298_v17  ;;  %v159_v27 = vpack.c.bf16 %v141_v24, %v140_v23  ;;  %v54_v28 = vunpack.c.l.bf16 %v1318_v26  ;;  %v143_v30 = vld [vmem:[%s1952_s2 + $0x68] sm:$0xff]  ;;  %v55_v31 = vunpack.c.h.bf16 %v1318_v26  ;;  %v1332_v32 = vld [vmem:[%s1954_s1 + $0x18] sm:$0xff]   ;;  %v144_v35 = vld [vmem:[%s1952_s2 + $0x70] sm:$0xff] }
   0x8   :  { %66 = vadd.xlane.f32.xlu0 %v50_v18  ;;  %70 = vadd.xlane.f32.xlu1 %v52_v20  ;;  %v160_v33 = vpack.c.bf16 %v143_v30, %v142_v29  ;;  %v56_v34 = vunpack.c.l.bf16 %v1332_v32  ;;  %v145_v36 = vld [vmem:[%s1952_s2 + $0x78] sm:$0xff]  ;;  %v57_v37 = vunpack.c.h.bf16 %v1332_v32  ;;  %v1345_v38 = vld [vmem:[%s1954_s1 + $0x20] sm:$0xff]   ;;  %v1352_v42 = vld [vmem:[%s1954_s1 + $0x28] sm:$0xff]  }
   0x9   :  { %997 = vmatpush3.bf16.msra.mxu0 %v155_v5  ;;  %v161_v39 = vpack.c.bf16 %v145_v36, %v144_v35  ;;  %v58_v40 = vunpack.c.l.bf16 %v1345_v38  ;;  %v59_v41 = vunpack.c.h.bf16 %v1345_v38  ;;  %v20_v43 = vld [vmem:[%s1953_s0 + $0x10] sm:$0xff]  ;;  %v21_v44 = vld [vmem:[%s1953_s0 + $0x18] sm:$0xff]  ;;  %v22_v45 = vld [vmem:[%s1953_s0 + $0x20] sm:$0xff]  ;;  %v60_v47 = vunpack.c.l.bf16 %v1352_v42 }
   0xa   :  { %998 = vmatprep.subr.bf16.mxu0 %v156_v8  ;;  %v23_v46 = vld [vmem:[%s1953_s0 + $0x28] sm:$0xff]  ;;  %v61_v48 = vunpack.c.h.bf16 %v1352_v42  ;;  %v1371_v49 = vld [vmem:[%s1954_s1 + $0x30] sm:$0xff]   ;;  %v147_v50 = vpack.c.bf16 %v21_v44, %v20_v43  ;;  %v1378_v54 = vld [vmem:[%s1954_s1 + $0x38] sm:$0xff]  }
   0xb   :  { %v148_v51 = vpack.c.bf16 %v23_v46, %v22_v45  ;;  %v62_v52 = vunpack.c.l.bf16 %v1371_v49  ;;  %v63_v53 = vunpack.c.h.bf16 %v1371_v49  ;;  %v24_v55 = vld [vmem:[%s1953_s0 + $0x30] sm:$0xff]  ;;  %v25_v56 = vld [vmem:[%s1953_s0 + $0x38] sm:$0xff]  ;;  %v26_v57 = vld [vmem:[%s1953_s0 + $0x40] sm:$0xff]  ;;  %v64_v59 = vunpack.c.l.bf16 %v1378_v54 }
   0xc   :  { %68 = vadd.xlane.f32.xlu0 %v51_v22  ;;  %72 = vadd.xlane.f32.xlu1 %v53_v25  ;;  %v27_v58 = vld [vmem:[%s1953_s0 + $0x48] sm:$0xff]  ;;  %v65_v60 = vunpack.c.h.bf16 %v1378_v54  ;;  %v149_v61 = vpack.c.bf16 %v25_v56, %v24_v55  ;;  %v28_v63 = vld [vmem:[%s1953_s0 + $0x50] sm:$0xff]  ;;  %v29_v0 = vld [vmem:[%s1953_s0 + $0x58] sm:$0xff] }
   0xd   :  { %999 = vmatpush3.bf16.msra.mxu0 %v156_v8  ;;  %v150_v62 = vpack.c.bf16 %v27_v58, %v26_v57  ;;  %v30_v1 = vld [vmem:[%s1953_s0 + $0x60] sm:$0xff]  ;;  %v31_v2 = vld [vmem:[%s1953_s0 + $0x68] sm:$0xff]  ;;  %v151_v3 = vpack.c.bf16 %v29_v0, %v28_v63  ;;  %v32_v5 = vld [vmem:[%s1953_s0 + $0x70] sm:$0xff] }
   0xe   :  { %1000 = vmatprep.subr.bf16.mxu0 %v157_v14  ;;  %v152_v4 = vpack.c.bf16 %v31_v2, %v30_v1  ;;  %v33_v6 = vld [vmem:[%s1953_s0 + $0x78] sm:$0xff] }
   0xf   :  { %v153_v7 = vpack.c.bf16 %v33_v6, %v32_v5 }
  0x10   :  { %74 = vadd.xlane.f32.xlu0 %v54_v28  ;;  %76 = vadd.xlane.f32.xlu1 %v55_v31 }
  0x11   :  { %1001 = vmatpush3.bf16.msra.mxu0 %v157_v14 }
  0x12   :  { %1002 = vmatprep.subr.bf16.mxu0 %v158_v21 }
  0x14   :  { %78 = vadd.xlane.f32.xlu0 %v56_v34  ;;  %80 = vadd.xlane.f32.xlu1 %v57_v37 }
  0x15   :  { %1003 = vmatpush3.bf16.msra.mxu0 %v158_v21 }
  0x16   :  { %1004 = vmatprep.subr.bf16.mxu0 %v159_v27 }
  0x18   :  { %82 = vadd.xlane.f32.xlu0 %v58_v40  ;;  %84 = vadd.xlane.f32.xlu1 %v59_v41 }
  0x19   :  { %1005 = vmatpush3.bf16.msra.mxu0 %v159_v27 }
  0x1a   :  { %1006 = vmatprep.subr.bf16.mxu0 %v160_v33 }
  0x1c   :  { %86 = vadd.xlane.f32.xlu0 %v60_v47  ;;  %88 = vadd.xlane.f32.xlu1 %v61_v48 }
  0x1d   :  { %1007 = vmatpush3.bf16.msra.mxu0 %v160_v33 }
  0x1e   :  { %1008 = vmatprep.subr.bf16.mxu0 %v161_v39 }
  0x20   :  { %90 = vadd.xlane.f32.xlu0 %v62_v52  ;;  %92 = vadd.xlane.f32.xlu1 %v63_v53 }
  0x21   :  { %1009 = vmatpush3.bf16.msra.mxu0 %v161_v39 }
  0x24   :  { %1011 = vmatmul.mubr.bf16.vlgmr.msra.gmra.mrb[0].mxu0 %v147_v50  ;;  %94 = vadd.xlane.f32.xlu0 %v64_v59 }
  0x25   :  { %1014 = vmatprep.mubr.bf16.mxu0 %v148_v51  ;;  %96 = vadd.xlane.f32.xlu1 %v65_v60 }
  0x2c   :  { %1015 = vmatmul.mubr.bf16.gmra.mrb[4].mxu0 %v149_v61 }
  0x2d   :  { %1018 = vmatprep.mubr.bf16.mxu0 %v150_v62 }
  0x34   :  { %1019 = vmatmul.mubr.bf16.gmra.mrb[8].mxu0 %v151_v3 }
  0x35   :  { %1022 = vmatprep.mubr.bf16.mxu0 %v152_v4 }
  0x3c   :  { %1023 = vmatmul.mubr.bf16.gmra.mrb[12].mxu0 %v153_v7 }
  0x3d   :  { %1074 = vmatprep.mubr.bf16.mxu0 %v1298_v17 }
  0x95   :  { %v71_v8 = vpop.xlane.xlu1 %70  ;;  %v67_v9 = vpop.xlane.xlu0 %66 }
  0x96   :  { %v98_v20 = vadd.f32 1.0, %v67_v9  ;;  %v100_v21 = vadd.f32 1.0, %v71_v8 }
  0x99   :  { %v73_v10 = vpop.xlane.xlu1 %72  ;;  %v69_v11 = vpop.xlane.xlu0 %68 }
  0x9a   :  { %v99_v15 = vadd.f32 1.0, %v69_v11  ;;  %v101_v18 = vadd.f32 1.0, %v73_v10 }
  0x9c   :  { %1138 = vrsqrt.f32 %v99_v15 }
  0x9d   :  { %v77_v12 = vpop.xlane.xlu1 %76  ;;  %v75_v13 = vpop.xlane.xlu0 %74  ;;  %1140 = vrsqrt.f32 %v101_v18 }
  0x9e   :  { %1142 = vrsqrt.f32 %v98_v20  ;;  %v102_v24 = vadd.f32 1.0, %v75_v13  ;;  %v103_v25 = vadd.f32 1.0, %v77_v12 }
  0x9f   :  { %1144 = vrsqrt.f32 %v100_v21 }
  0xa0   :  { %1146 = vrsqrt.f32 %v102_v24 }
  0xa1   :  { %v81_v14 = vpop.xlane.xlu1 %80  ;;  %v79_v16 = vpop.xlane.xlu0 %78  ;;  %1148 = vrsqrt.f32 %v103_v25 }
  0xa2   :  { %v105_v27 = vadd.f32 1.0, %v81_v14  ;;  %v104_v29 = vadd.f32 1.0, %v79_v16 }
  0xa4   :  { %1150 = vrsqrt.f32 %v105_v27 }
  0xa5   :  { %v85_v22 = vpop.xlane.xlu1 %84  ;;  %v83_v23 = vpop.xlane.xlu0 %82  ;;  %1152 = vrsqrt.f32 %v104_v29 }
  0xa6   :  { %v1413_v31 = vpop.eup %1138  ;;  %v106_v35 = vadd.f32 1.0, %v83_v23  ;;  %v107_v39 = vadd.f32 1.0, %v85_v22 }
  0xa7   :  { %v1415_v34 = vpop.eup %1140 }
  0xa8   :  { %v1417_v37 = vpop.eup %1142  ;;  %1154 = vrsqrt.f32 %v106_v35 }
  0xa9   :  { %v89_v28 = vpop.xlane.xlu1 %88  ;;  %v87_v30 = vpop.xlane.xlu0 %86  ;;  %1156 = vrsqrt.f32 %v107_v39 }
  0xaa   :  { %v1419_v43 = vpop.eup %1144  ;;  %v109_v45 = vadd.f32 1.0, %v89_v28  ;;  %v108_v51 = vadd.f32 1.0, %v87_v30 }
  0xab   :  { %v1435_v55 = vpop.eup %1146 }
  0xac   :  { %1158 = vrsqrt.f32 %v109_v45  ;;  %v1437_v56 = vpop.eup %1148 }
  0xad   :  { %v93_v41 = vpop.xlane.xlu1 %92  ;;  %v91_v50 = vpop.xlane.xlu0 %90  ;;  %1160 = vrsqrt.f32 %v108_v51 }
  0xae   :  { %v1441_v60 = vpop.eup %1150  ;;  %v110_v61 = vadd.f32 1.0, %v91_v50  ;;  %v111_v63 = vadd.f32 1.0, %v93_v41 }
  0xaf   :  { %v1443_v2 = vpop.eup %1152 }
  0xb0   :  { %1162 = vrsqrt.f32 %v110_v61 }
  0xb1   :  { %v95_v1 = vpop.xlane.xlu0 %94  ;;  %1164 = vrsqrt.f32 %v111_v63 }
  0xb2   :  { %v97_v59 = vpop.xlane.xlu1 %96  ;;  %v112_v8 = vadd.f32 1.0, %v95_v1  ;;  %v1459_v11 = vpop.eup %1154 }
  0xb3   :  { %v113_v4 = vadd.f32 1.0, %v97_v59  ;;  %v1461_v12 = vpop.eup %1156 }
  0xb5   :  { %1166 = vrsqrt.f32 %v113_v4 }
  0xb6   :  { %v1465_v15 = vpop.eup %1158  ;;  %1168 = vrsqrt.f32 %v112_v8 }
  0xb7   :  { %v1467_v20 = vpop.eup %1160 }
  0xba   :  { %v1483_v28 = vpop.eup %1162 }
  0xbb   :  { %v1485_v29 = vpop.eup %1164 }
  0xbf   :  { %v1489_v35 = vpop.eup %1166 }
  0xf7   :  { %v1012_v33 = vpop.f32.mrb[0].mxu0 }
  0xf8   :  { %v196_v36 = vpop.f32.mrb[1].mxu0  ;;  %v1431_v52 = vmul.f32 %v1419_v43, %v1012_v33 }
  0xf9   :  { %v1013_v40 = vpop.f32.mrb[2].mxu0  ;;  %v1422_v46 = vmul.f32 %v1417_v37, %v196_v36 }
  0xfa   :  { %v199_v44 = vpop.f32.mrb[3].mxu0  ;;  %v1425_v47 = vmul.f32 %v1415_v34, %v1013_v40  ;;  %v1491_v40 = vpop.eup %1168 }
  0xfb   :  { %v1428_v48 = vmul.f32 %v1413_v31, %v199_v44 }
  0xfc   :  { %v276_v57 = vpack.c.bf16 %v1425_v47, %v1431_v52 }
  0xfd   :  { %v275_v53 = vpack.c.bf16 %v1428_v48, %v1422_v46 }
  0xff   :  { %v1016_v58 = vpop.f32.mrb[4].mxu0  ;;  %1026 = vmatprep.subr.bf16.mxu1 %v275_v53 }
 0x100   :  { %v212_v62 = vpop.f32.mrb[5].mxu0  ;;  %1027 = vmatpush3.bf16.msra.mxu1 %v275_v53  ;;  %v1455_v9 = vmul.f32 %v1443_v2, %v1016_v58 }
 0x101   :  { %v1017_v0 = vpop.f32.mrb[6].mxu0  ;;  %1028 = vmatprep.subr.bf16.mxu1 %v276_v57  ;;  %v1446_v5 = vmul.f32 %v1435_v55, %v212_v62 }
 0x102   :  { %v215_v3 = vpop.f32.mrb[7].mxu0  ;;  %v1449_v6 = vmul.f32 %v1441_v60, %v1017_v0 }
 0x103   :  { %v1452_v7 = vmul.f32 %v1437_v56, %v215_v3 }
 0x104   :  { %1029 = vmatpush3.bf16.msra.mxu1 %v276_v57  ;;  %v278_v13 = vpack.c.bf16 %v1449_v6, %v1455_v9 }
 0x105   :  { %v277_v10 = vpack.c.bf16 %v1452_v7, %v1446_v5 }
 0x107   :  { %v1020_v14 = vpop.f32.mrb[8].mxu0  ;;  %1030 = vmatprep.subr.bf16.mxu1 %v277_v10 }
 0x108   :  { %v228_v16 = vpop.f32.mrb[9].mxu0  ;;  %1031 = vmatpush3.bf16.msra.mxu1 %v277_v10  ;;  %v1479_v25 = vmul.f32 %v1467_v20, %v1020_v14 }
 0x109   :  { %v1021_v18 = vpop.f32.mrb[10].mxu0  ;;  %1032 = vmatprep.subr.bf16.mxu1 %v278_v13  ;;  %v1470_v22 = vmul.f32 %v1459_v11, %v228_v16 }
 0x10a   :  { %v231_v21 = vpop.f32.mrb[11].mxu0  ;;  %v1473_v23 = vmul.f32 %v1465_v15, %v1021_v18 }
 0x10b   :  { %v1476_v24 = vmul.f32 %v1461_v12, %v231_v21 }
 0x10c   :  { %1033 = vmatpush3.bf16.msra.mxu1 %v278_v13  ;;  %v280_v30 = vpack.c.bf16 %v1473_v23, %v1479_v25 }
 0x10d   :  { %v279_v27 = vpack.c.bf16 %v1476_v24, %v1470_v22 }
 0x10f   :  { %v1024_v33 = vpop.f32.mrb[12].mxu0  ;;  %1034 = vmatprep.subr.bf16.mxu1 %v279_v27 }
 0x110   :  { %v244_v36 = vpop.f32.mrb[13].mxu0  ;;  %1035 = vmatpush3.bf16.msra.mxu1 %v279_v27  ;;  %v1503_v51 = vmul.f32 %v1491_v40, %v1024_v33 }
 0x111   :  { %v1025_v39 = vpop.f32.mrb[14].mxu0  ;;  %1036 = vmatprep.subr.bf16.mxu1 %v280_v30  ;;  %v1494_v44 = vmul.f32 %v1483_v28, %v244_v36 }
 0x112   :  { %v247_v41 = vpop.f32.mrb[15].mxu0  ;;  %v1497_v45 = vmul.f32 %v1489_v35, %v1025_v39 }
 0x113   :  { %v1500_v50 = vmul.f32 %v1485_v29, %v247_v41 }
 0x114   :  { %1037 = vmatpush3.bf16.msra.mxu1 %v280_v30  ;;  %v282_v57 = vpack.c.bf16 %v1497_v45, %v1503_v51 }
 0x115   :  { %v281_v53 = vpack.c.bf16 %v1500_v50, %v1494_v44 }
 0x117   :  { %1038 = vmatprep.subr.bf16.mxu1 %v281_v53 }
 0x118   :  { %1039 = vmatpush3.bf16.msra.mxu1 %v281_v53 }
 0x119   :  { %1040 = vmatprep.subr.bf16.mxu1 %v282_v57 }
 0x11c   :  { %1041 = vmatpush3.bf16.msra.mxu1 %v282_v57 }
 0x11f   :  { %1043 = vmatmul.mubr.bf16.vlgmr.msra.gmra.mrb[0].mxu1 %v1304_v19 }
 0x120   :  { %1046 = vmatprep.mubr.bf16.mxu1 %v1318_v26 }
 0x127   :  { %1047 = vmatmul.mubr.bf16.gmra.mrb[4].mxu1 %v1332_v32 }
 0x128   :  { %1050 = vmatprep.mubr.bf16.mxu1 %v1345_v38 }
 0x12f   :  { %1051 = vmatmul.mubr.bf16.gmra.mrb[8].mxu1 %v1352_v42 }
 0x130   :  { %1054 = vmatprep.mubr.bf16.mxu1 %v1371_v49 }
 0x137   :  { %1055 = vmatmul.mubr.bf16.gmra.mrb[12].mxu1 %v1378_v54 }
 0x138   :  { %1106 = vmatprep.mubr.bf16.mxu1 %v1298_v17 }
 0x1f2   :  { %v1044_v58 = vpop.f32.mrb[0].mxu1 }
 0x1f3   :  { %v365_v59 = vpop.f32.mrb[1].mxu1  ;;  %v374_v61 = vadd.f32 %v1044_v58, %v1431_v52 }
 0x1f4   :  { %v366_v62 = vadd.f32 %v365_v59, %v1422_v46  ;;  %v1045_v63 = vpop.f32.mrb[2].mxu1 }
 0x1f5   :  { %v377_v0 = vadd.f32 %v1045_v63, %v1425_v47  ;;  %v368_v1 = vpop.f32.mrb[3].mxu1  ;;  %v430_v10 = vmul.f32 %v1419_v43, %v374_v61 }
 0x1f6   :  { %v428_v3 = vmul.f32 %v1417_v37, %v366_v62  ;;  %v369_v4 = vadd.f32 %v368_v1, %v1428_v48 }
 0x1f7   :  { %v431_v8 = vmul.f32 %v1415_v34, %v377_v0  ;;  %v1535_v16 = vmul.f32 %v1419_v43, %v430_v10 }
 0x1f8   :  { %v429_v17 = vmul.f32 %v1413_v31, %v369_v4  ;;  %v1526_v13 = vmul.f32 %v1417_v37, %v428_v3 }
 0x1f9   :  { %v1529_v52 = vmul.f32 %v1415_v34, %v431_v8 }
 0x1fa   :  { %v1532_v46 = vmul.f32 %v1413_v31, %v429_v17  ;;  %v1048_v47 = vpop.f32.mrb[4].mxu1 }
 0x1fb   :  { %v381_v14 = vpop.f32.mrb[5].mxu1  ;;  %v390_v48 = vadd.f32 %v1048_v47, %v1455_v9  ;;  %v461_v41 = vpack.c.bf16 %v1529_v52, %v1535_v16 }
 0x1fc   :  { %v382_v18 = vadd.f32 %v381_v14, %v1446_v5  ;;  %v1049_v21 = vpop.f32.mrb[6].mxu1  ;;  %v460_v27 = vpack.c.bf16 %v1532_v46, %v1526_v13 }
 0x1fd   :  { %v393_v30 = vadd.f32 %v1049_v21, %v1449_v6  ;;  %v384_v33 = vpop.f32.mrb[7].mxu1  ;;  %v434_v5 = vmul.f32 %v1443_v2, %v390_v48 }
 0x1fe   :  { %v432_v36 = vmul.f32 %v1435_v55, %v382_v18  ;;  %v385_v39 = vadd.f32 %v384_v33, %v1452_v7  ;;  %1058 = vmatprep.subr.bf16.mxu0 %v460_v27 }
 0x1ff   :  { %v435_v53 = vmul.f32 %v1441_v60, %v393_v30  ;;  %1059 = vmatpush3.bf16.msra.mxu0 %v460_v27  ;;  %v1559_v61 = vmul.f32 %v1443_v2, %v434_v5 }
 0x200   :  { %v433_v9 = vmul.f32 %v1437_v56, %v385_v39  ;;  %1060 = vmatprep.subr.bf16.mxu0 %v461_v41  ;;  %v1550_v57 = vmul.f32 %v1435_v55, %v432_v36 }
 0x201   :  { %v1553_v6 = vmul.f32 %v1441_v60, %v435_v53 }
 0x202   :  { %v1556_v7 = vmul.f32 %v1437_v56, %v433_v9  ;;  %v1052_v58 = vpop.f32.mrb[8].mxu1 }
 0x203   :  { %v397_v59 = vpop.f32.mrb[9].mxu1  ;;  %1061 = vmatpush3.bf16.msra.mxu0 %v461_v41  ;;  %v406_v62 = vadd.f32 %v1052_v58, %v1479_v25  ;;  %v463_v17 = vpack.c.bf16 %v1553_v6, %v1559_v61 }
 0x204   :  { %v398_v63 = vadd.f32 %v397_v59, %v1470_v22  ;;  %v1053_v0 = vpop.f32.mrb[10].mxu1  ;;  %v462_v1 = vpack.c.bf16 %v1556_v7, %v1550_v57 }
 0x205   :  { %v409_v3 = vadd.f32 %v1053_v0, %v1473_v23  ;;  %v400_v4 = vpop.f32.mrb[11].mxu1  ;;  %v438_v22 = vmul.f32 %v1467_v20, %v406_v62 }
 0x206   :  { %v436_v8 = vmul.f32 %v1459_v11, %v398_v63  ;;  %v401_v10 = vadd.f32 %v400_v4, %v1476_v24  ;;  %1062 = vmatprep.subr.bf16.mxu0 %v462_v1 }
 0x207   :  { %v439_v47 = vmul.f32 %v1465_v15, %v409_v3  ;;  %1063 = vmatpush3.bf16.msra.mxu0 %v462_v1  ;;  %v1583_v21 = vmul.f32 %v1467_v20, %v438_v22 }
 0x208   :  { %v437_v25 = vmul.f32 %v1461_v12, %v401_v10  ;;  %1064 = vmatprep.subr.bf16.mxu0 %v463_v17  ;;  %v1574_v14 = vmul.f32 %v1459_v11, %v436_v8 }
 0x209   :  { %v1577_v23 = vmul.f32 %v1465_v15, %v439_v47 }
 0x20a   :  { %v1580_v24 = vmul.f32 %v1461_v12, %v437_v25  ;;  %v1056_v48 = vpop.f32.mrb[12].mxu1 }
 0x20b   :  { %v413_v18 = vpop.f32.mrb[13].mxu1  ;;  %1065 = vmatpush3.bf16.msra.mxu0 %v463_v17  ;;  %v422_v27 = vadd.f32 %v1056_v48, %v1503_v51  ;;  %v465_v9 = vpack.c.bf16 %v1577_v23, %v1583_v21 }
 0x20c   :  { %v414_v30 = vadd.f32 %v413_v18, %v1494_v44  ;;  %v1057_v33 = vpop.f32.mrb[14].mxu1  ;;  %v464_v36 = vpack.c.bf16 %v1580_v24, %v1574_v14 }
 0x20d   :  { %v425_v39 = vadd.f32 %v1057_v33, %v1497_v45  ;;  %v416_v41 = vpop.f32.mrb[15].mxu1  ;;  %v442_v44 = vmul.f32 %v1491_v40, %v422_v27 }
 0x20e   :  { %v440_v53 = vmul.f32 %v1483_v28, %v414_v30  ;;  %v417_v5 = vadd.f32 %v416_v41, %v1500_v50  ;;  %1066 = vmatprep.subr.bf16.mxu0 %v464_v36 }
 0x20f   :  { %v443_v58 = vmul.f32 %v1489_v35, %v425_v39  ;;  %1067 = vmatpush3.bf16.msra.mxu0 %v464_v36  ;;  %v1607_v62 = vmul.f32 %v1491_v40, %v442_v44 }
 0x210   :  { %v441_v51 = vmul.f32 %v1485_v29, %v417_v5  ;;  %1068 = vmatprep.subr.bf16.mxu0 %v465_v9  ;;  %v1598_v59 = vmul.f32 %v1483_v28, %v440_v53 }
 0x211   :  { %v1601_v45 = vmul.f32 %v1489_v35, %v443_v58 }
 0x212   :  { %v1604_v50 = vmul.f32 %v1485_v29, %v441_v51 }
 0x213   :  { %1069 = vmatpush3.bf16.msra.mxu0 %v465_v9  ;;  %v467_v0 = vpack.c.bf16 %v1601_v45, %v1607_v62 }
 0x214   :  { %v466_v63 = vpack.c.bf16 %v1604_v50, %v1598_v59 }
 0x216   :  { %1070 = vmatprep.subr.bf16.mxu0 %v466_v63 }
 0x217   :  { %1071 = vmatpush3.bf16.msra.mxu0 %v466_v63 }
 0x218   :  { %1072 = vmatprep.subr.bf16.mxu0 %v467_v0 }
 0x21b   :  { %1073 = vmatpush3.bf16.msra.mxu0 %v467_v0 }
 0x21e   :  { %1075 = vmatmul.mubr.bf16.vlgmr.msra.gmra.mrb[16].mxu0 %v1304_v19 }
 0x21f   :  { %1078 = vmatprep.mubr.bf16.mxu0 %v1318_v26 }
 0x226   :  { %1079 = vmatmul.mubr.bf16.gmra.mrb[20].mxu0 %v1332_v32 }
 0x227   :  { %1082 = vmatprep.mubr.bf16.mxu0 %v1345_v38 }
 0x22e   :  { %1083 = vmatmul.mubr.bf16.gmra.mrb[24].mxu0 %v1352_v42 }
 0x22f   :  { %1086 = vmatprep.mubr.bf16.mxu0 %v1371_v49 }
 0x236   :  { %1087 = vmatmul.mubr.bf16.gmra.mrb[28].mxu0 %v1378_v54 }
 0x2f1   :  { %v1076_v1 = vpop.f32.mrb[16].mxu0 }
 0x2f2   :  { %v502_v3 = vpop.f32.mrb[17].mxu0  ;;  %v511_v4 = vadd.f32 %v1076_v1, %v1535_v16 }
 0x2f3   :  { %v503_v8 = vadd.f32 %v502_v3, %v1526_v13  ;;  %v1077_v10 = vpop.f32.mrb[18].mxu0 }
 0x2f4   :  { %v514_v17 = vadd.f32 %v1077_v10, %v1529_v52  ;;  %v505_v47 = vpop.f32.mrb[19].mxu0  ;;  %v567_v18 = vmul.f32 %v1419_v43, %v511_v4 }
 0x2f5   :  { %v565_v22 = vmul.f32 %v1417_v37, %v503_v8  ;;  %v506_v25 = vadd.f32 %v505_v47, %v1532_v46 }
 0x2f6   :  { %v568_v48 = vmul.f32 %v1415_v34, %v514_v17  ;;  %v1638_v36 = vmul.f32 %v1419_v43, %v567_v18 }
 0x2f7   :  { %v566_v27 = vmul.f32 %v1413_v31, %v506_v25  ;;  %v1629_v30 = vmul.f32 %v1417_v37, %v565_v22 }
 0x2f8   :  { %v1632_v16 = vmul.f32 %v1415_v34, %v568_v48 }
 0x2f9   :  { %v1635_v13 = vmul.f32 %v1413_v31, %v566_v27  ;;  %v1080_v52 = vpop.f32.mrb[20].mxu0 }
 0x2fa   :  { %v518_v33 = vpop.f32.mrb[21].mxu0  ;;  %v527_v46 = vadd.f32 %v1080_v52, %v1559_v61  ;;  %v598_v51 = vpack.c.bf16 %v1632_v16, %v1638_v36 }
 0x2fb   :  { %v519_v39 = vadd.f32 %v518_v33, %v1550_v57  ;;  %v1081_v41 = vpop.f32.mrb[22].mxu0  ;;  %v597_v53 = vpack.c.bf16 %v1635_v13, %v1629_v30 }
 0x2fc   :  { %v530_v5 = vadd.f32 %v1081_v41, %v1553_v6  ;;  %v521_v9 = vpop.f32.mrb[23].mxu0  ;;  %v571_v57 = vmul.f32 %v1443_v2, %v527_v46 }
 0x2fd   :  { %v569_v58 = vmul.f32 %v1435_v55, %v519_v39  ;;  %v522_v44 = vadd.f32 %v521_v9, %v1556_v7  ;;  %1090 = vmatprep.subr.bf16.mxu1 %v597_v53 }
 0x2fe   :  { %v572_v63 = vmul.f32 %v1441_v60, %v530_v5  ;;  %1091 = vmatpush3.bf16.msra.mxu1 %v597_v53  ;;  %v1662_v4 = vmul.f32 %v1443_v2, %v571_v57 }
 0x2ff   :  { %v570_v61 = vmul.f32 %v1437_v56, %v522_v44  ;;  %1092 = vmatprep.subr.bf16.mxu1 %v598_v51  ;;  %v1653_v0 = vmul.f32 %v1435_v55, %v569_v58 }
 0x300   :  { %v1656_v6 = vmul.f32 %v1441_v60, %v572_v63 }
 0x301   :  { %v1659_v7 = vmul.f32 %v1437_v56, %v570_v61  ;;  %v1084_v1 = vpop.f32.mrb[24].mxu0 }
 0x302   :  { %v534_v3 = vpop.f32.mrb[25].mxu0  ;;  %1093 = vmatpush3.bf16.msra.mxu1 %v598_v51  ;;  %v543_v8 = vadd.f32 %v1084_v1, %v1583_v21  ;;  %v600_v27 = vpack.c.bf16 %v1656_v6, %v1662_v4 }
 0x303   :  { %v535_v10 = vadd.f32 %v534_v3, %v1574_v14  ;;  %v1085_v17 = vpop.f32.mrb[26].mxu0  ;;  %v599_v47 = vpack.c.bf16 %v1659_v7, %v1653_v0 }
 0x304   :  { %v546_v22 = vadd.f32 %v1085_v17, %v1577_v23  ;;  %v537_v25 = vpop.f32.mrb[27].mxu0  ;;  %v575_v14 = vmul.f32 %v1467_v20, %v543_v8 }
 0x305   :  { %v573_v48 = vmul.f32 %v1459_v11, %v535_v10  ;;  %v538_v18 = vadd.f32 %v537_v25, %v1580_v24  ;;  %1094 = vmatprep.subr.bf16.mxu1 %v599_v47 }
 0x306   :  { %v576_v52 = vmul.f32 %v1465_v15, %v546_v22  ;;  %1095 = vmatpush3.bf16.msra.mxu1 %v599_v47  ;;  %v1686_v41 = vmul.f32 %v1467_v20, %v575_v14 }
 0x307   :  { %v574_v21 = vmul.f32 %v1461_v12, %v538_v18  ;;  %1096 = vmatprep.subr.bf16.mxu1 %v600_v27  ;;  %v1677_v33 = vmul.f32 %v1459_v11, %v573_v48 }
 0x308   :  { %v1680_v23 = vmul.f32 %v1465_v15, %v576_v52 }
 0x309   :  { %v1683_v24 = vmul.f32 %v1461_v12, %v574_v21  ;;  %v1088_v46 = vpop.f32.mrb[28].mxu0 }
 0x30a   :  { %v550_v39 = vpop.f32.mrb[29].mxu0  ;;  %1097 = vmatpush3.bf16.msra.mxu1 %v600_v27  ;;  %v559_v53 = vadd.f32 %v1088_v46, %v1607_v62  ;;  %v602_v61 = vpack.c.bf16 %v1680_v23, %v1686_v41 }
 0x30b   :  { %v551_v5 = vadd.f32 %v550_v39, %v1598_v59  ;;  %v1089_v9 = vpop.f32.mrb[30].mxu0  ;;  %v601_v58 = vpack.c.bf16 %v1683_v24, %v1677_v33 }
 0x30c   :  { %v562_v44 = vadd.f32 %v1089_v9, %v1601_v45  ;;  %v553_v51 = vpop.f32.mrb[31].mxu0  ;;  %v579_v59 = vmul.f32 %v1491_v40, %v559_v53 }
 0x30d   :  { %v577_v63 = vmul.f32 %v1483_v28, %v551_v5  ;;  %v554_v57 = vadd.f32 %v553_v51, %v1604_v50  ;;  %1098 = vmatprep.subr.bf16.mxu1 %v601_v58 }
 0x30e   :  { %v580_v1 = vmul.f32 %v1489_v35, %v562_v44  ;;  %1099 = vmatpush3.bf16.msra.mxu1 %v601_v58  ;;  %v1710_v8 = vmul.f32 %v1491_v40, %v579_v59 }
 0x30f   :  { %v578_v62 = vmul.f32 %v1485_v29, %v554_v57  ;;  %1100 = vmatprep.subr.bf16.mxu1 %v602_v61  ;;  %v1701_v3 = vmul.f32 %v1483_v28, %v577_v63 }
 0x310   :  { %v1704_v45 = vmul.f32 %v1489_v35, %v580_v1 }
 0x311   :  { %v1707_v50 = vmul.f32 %v1485_v29, %v578_v62 }
 0x312   :  { %1101 = vmatpush3.bf16.msra.mxu1 %v602_v61  ;;  %v604_v17 = vpack.c.bf16 %v1704_v45, %v1710_v8 }
 0x313   :  { %v603_v10 = vpack.c.bf16 %v1707_v50, %v1701_v3 }
 0x315   :  { %1102 = vmatprep.subr.bf16.mxu1 %v603_v10 }
 0x316   :  { %1103 = vmatpush3.bf16.msra.mxu1 %v603_v10 }
 0x317   :  { %1104 = vmatprep.subr.bf16.mxu1 %v604_v17 }
 0x31a   :  { %1105 = vmatpush3.bf16.msra.mxu1 %v604_v17 }
 0x31d   :  { %1107 = vmatmul.mubr.bf16.vlgmr.msra.gmra.mrb[16].mxu1 %v1304_v19  ;;  %v1728_v19 = vld [vmem:[%s1955_s3] ss:$0 sm:$0xff] }
 0x31e   :  { %1110 = vmatprep.mubr.bf16.mxu1 %v1318_v26 }
 0x325   :  { %1111 = vmatmul.mubr.bf16.gmra.mrb[20].mxu1 %v1332_v32 }
 0x326   :  { %1114 = vmatprep.mubr.bf16.mxu1 %v1345_v38 }
 0x32d   :  { %1115 = vmatmul.mubr.bf16.gmra.mrb[24].mxu1 %v1352_v42 }
 0x32e   :  { %1118 = vmatprep.mubr.bf16.mxu1 %v1371_v49 }
 0x335   :  { %1119 = vmatmul.mubr.bf16.gmra.mrb[28].mxu1 %v1378_v54 }
 0x3f0   :  { %v1108_v47 = vpop.f32.mrb[16].mxu1 }
 0x3f1   :  { %v648_v22 = vadd.f32 %v1108_v47, %v1638_v36  ;;  %v639_v25 = vpop.f32.mrb[17].mxu1 }
 0x3f2   :  { %v640_v48 = vadd.f32 %v639_v25, %v1629_v30  ;;  %v1109_v18 = vpop.f32.mrb[18].mxu1 }
 0x3f3   :  { %v704_v26 = vmul.f32 %v1419_v43, %v648_v22  ;;  %v651_v32 = vadd.f32 %v1109_v18, %v1632_v16  ;;  %v642_v38 = vpop.f32.mrb[19].mxu1 }
 0x3f4   :  { %v643_v42 = vadd.f32 %v642_v38, %v1635_v13  ;;  %v702_v49 = vmul.f32 %v1417_v37, %v640_v48 }
 0x3f5   :  { %v705_v54 = vmul.f32 %v1415_v34, %v651_v32  ;;  %v1736_v36 = vadd.f32 %v1728_v19, %v704_v26 }
 0x3f6   :  { %v703_v30 = vmul.f32 %v1413_v31, %v643_v42  ;;  %v1746_v37 = vadd.f32 %v1728_v19, %v702_v49 }
 0x3f7   :  { %745 = vmax.xlane.f32.xlu0 %v1736_v36  ;;  %v1741_v27 = vadd.f32 %v1728_v19, %v705_v54 }
 0x3f8   :  { %v1112_v43 = vpop.f32.mrb[20].mxu1  ;;  %v1753_v46 = vadd.f32 %v1728_v19, %v703_v30 }
 0x3f9   :  { %v664_v16 = vadd.f32 %v1112_v43, %v1662_v4  ;;  %747 = vmax.xlane.f32.xlu1 %v1741_v27  ;;  %v655_v13 = vpop.f32.mrb[21].mxu1 }
 0x3fa   :  { %v656_v34 = vadd.f32 %v655_v13, %v1653_v0  ;;  %v1113_v52 = vpop.f32.mrb[22].mxu1 }
 0x3fb   :  { %v708_v14 = vmul.f32 %v1443_v2, %v664_v16  ;;  %v667_v31 = vadd.f32 %v1113_v52, %v1656_v6  ;;  %v658_v21 = vpop.f32.mrb[23].mxu1  ;;  %741 = vmax.xlane.f32.xlu0 %v1746_v37 }
 0x3fc   :  { %v659_v4 = vadd.f32 %v658_v21, %v1659_v7  ;;  %v706_v39 = vmul.f32 %v1435_v55, %v656_v34 }
 0x3fd   :  { %v709_v53 = vmul.f32 %v1441_v60, %v667_v31  ;;  %743 = vmax.xlane.f32.xlu1 %v1753_v46  ;;  %v1760_v0 = vadd.f32 %v1728_v19, %v708_v14 }
 0x3fe   :  { %v707_v2 = vmul.f32 %v1437_v56, %v659_v4  ;;  %v1770_v55 = vadd.f32 %v1728_v19, %v706_v39 }
 0x3ff   :  { %753 = vmax.xlane.f32.xlu0 %v1760_v0  ;;  %v1765_v6 = vadd.f32 %v1728_v19, %v709_v53 }
 0x400   :  { %v1116_v5 = vpop.f32.mrb[24].mxu1  ;;  %v1777_v63 = vadd.f32 %v1728_v19, %v707_v2 }
 0x401   :  { %v680_v9 = vadd.f32 %v1116_v5, %v1686_v41  ;;  %v671_v7 = vpop.f32.mrb[25].mxu1  ;;  %755 = vmax.xlane.f32.xlu1 %v1765_v6 }
 0x402   :  { %v672_v60 = vadd.f32 %v671_v7, %v1677_v33  ;;  %v1117_v58 = vpop.f32.mrb[26].mxu1 }
 0x403   :  { %v712_v44 = vmul.f32 %v1467_v20, %v680_v9  ;;  %v683_v56 = vadd.f32 %v1117_v58, %v1680_v23  ;;  %v674_v51 = vpop.f32.mrb[27].mxu1  ;;  %749 = vmax.xlane.f32.xlu0 %v1770_v55 }
 0x404   :  { %v675_v41 = vadd.f32 %v674_v51, %v1683_v24  ;;  %v710_v57 = vmul.f32 %v1459_v11, %v672_v60 }
 0x405   :  { %v713_v61 = vmul.f32 %v1465_v15, %v683_v56  ;;  %751 = vmax.xlane.f32.xlu1 %v1777_v63  ;;  %v1784_v33 = vadd.f32 %v1728_v19, %v712_v44 }
 0x406   :  { %v711_v20 = vmul.f32 %v1461_v12, %v675_v41  ;;  %v1793_v11 = vadd.f32 %v1728_v19, %v710_v57 }
 0x407   :  { %761 = vmax.xlane.f32.xlu0 %v1784_v33  ;;  %v1789_v23 = vadd.f32 %v1728_v19, %v713_v61 }
 0x408   :  { %v1120_v1 = vpop.f32.mrb[28].mxu1  ;;  %v1799_v12 = vadd.f32 %v1728_v19, %v711_v20 }
 0x409   :  { %v687_v59 = vpop.f32.mrb[29].mxu1  ;;  %763 = vmax.xlane.f32.xlu1 %v1789_v23  ;;  %v696_v15 = vadd.f32 %v1120_v1, %v1710_v8 }
 0x40a   :  { %v688_v24 = vadd.f32 %v687_v59, %v1701_v3  ;;  %v1121_v62 = vpop.f32.mrb[30].mxu1 }
 0x40b   :  { %v690_v10 = vpop.f32.mrb[31].mxu1  ;;  %757 = vmax.xlane.f32.xlu0 %v1793_v11  ;;  %v699_v47 = vadd.f32 %v1121_v62, %v1704_v45  ;;  %v716_v25 = vmul.f32 %v1491_v40, %v696_v15 }
 0x40c   :  { %v714_v17 = vmul.f32 %v1483_v28, %v688_v24  ;;  %v691_v22 = vadd.f32 %v690_v10, %v1707_v50 }
 0x40d   :  { %759 = vmax.xlane.f32.xlu1 %v1799_v12  ;;  %v717_v48 = vmul.f32 %v1489_v35, %v699_v47  ;;  %v1817_v28 = vadd.f32 %v1728_v19, %v716_v25 }
 0x40e   :  { %v715_v8 = vmul.f32 %v1485_v29, %v691_v22  ;;  %v1808_v3 = vadd.f32 %v1728_v19, %v714_v17 }
 0x40f   :  { %v1821_v40 = vadd.f32 %v1728_v19, %v717_v48 }
 0x410   :  { %765 = vmax.xlane.f32.xlu0 %v1808_v3  ;;  %v1813_v18 = vadd.f32 %v1728_v19, %v715_v8 }
 0x412   :  { %767 = vmax.xlane.f32.xlu1 %v1813_v18 }
 0x414   :  { %769 = vmax.xlane.f32.xlu0 %v1817_v28 }
 0x416   :  { %771 = vmax.xlane.f32.xlu1 %v1821_v40 }
 0x484   :  { %v746_v29 = vpop.xlane.xlu0 %745 }
 0x485   :  { %v1825_v35 = vsub.f32 %v1736_v36, %v746_v29 }
 0x486   :  { %v748_v45 = vpop.xlane.xlu1 %747 }
 0x487   :  { %v793_v50 = vmul.f32 1.442695, %v1825_v35  ;;  %v1829_v26 = vsub.f32 %v1741_v27, %v748_v45 }
 0x488   :  { %v742_v32 = vpop.xlane.xlu0 %741 }
 0x489   :  { %1170 = vpow2.f32 %v793_v50  ;;  %v795_v38 = vmul.f32 1.442695, %v1829_v26  ;;  %v1833_v42 = vsub.f32 %v1746_v37, %v742_v32 }
 0x48a   :  { %v744_v19 = vpop.xlane.xlu1 %743 }
 0x48b   :  { %1172 = vpow2.f32 %v795_v38  ;;  %v789_v49 = vmul.f32 1.442695, %v1833_v42  ;;  %v1837_v54 = vsub.f32 %v1753_v46, %v744_v19 }
 0x48c   :  { %v754_v36 = vpop.xlane.xlu0 %753 }
 0x48d   :  { %1174 = vpow2.f32 %v789_v49  ;;  %v791_v30 = vmul.f32 1.442695, %v1837_v54  ;;  %v1841_v27 = vsub.f32 %v1760_v0, %v754_v36 }
 0x48e   :  { %v756_v43 = vpop.xlane.xlu1 %755 }
 0x48f   :  { %1176 = vpow2.f32 %v791_v30  ;;  %v801_v16 = vmul.f32 1.442695, %v1841_v27  ;;  %v1845_v13 = vsub.f32 %v1765_v6, %v756_v43 }
 0x490   :  { %v750_v37 = vpop.xlane.xlu0 %749 }
 0x491   :  { %1178 = vpow2.f32 %v801_v16  ;;  %v803_v34 = vmul.f32 1.442695, %v1845_v13  ;;  %v1849_v52 = vsub.f32 %v1770_v55, %v750_v37 }
 0x492   :  { %v752_v14 = vpop.xlane.xlu1 %751 }
 0x493   :  { %v1171_v31 = vpop.eup %1170  ;;  %1180 = vpow2.f32 %v803_v34  ;;  %v797_v21 = vmul.f32 1.442695, %v1849_v52  ;;  %v1853_v46 = vsub.f32 %v1777_v63, %v752_v14 }
 0x494   :  { %825 = vadd.xlane.f32.xlu0 %v1171_v31  ;;  %v762_v4 = vpop.xlane.xlu0 %761 }
 0x495   :  { %v1173_v39 = vpop.eup %1172  ;;  %1182 = vpow2.f32 %v797_v21  ;;  %v799_v53 = vmul.f32 1.442695, %v1853_v46  ;;  %v1857_v0 = vsub.f32 %v1784_v33, %v762_v4 }
 0x496   :  { %827 = vadd.xlane.f32.xlu1 %v1173_v39  ;;  %v764_v2 = vpop.xlane.xlu1 %763 }
 0x497   :  { %v1175_v6 = vpop.eup %1174  ;;  %1184 = vpow2.f32 %v799_v53  ;;  %v809_v5 = vmul.f32 1.442695, %v1857_v0  ;;  %v1861_v9 = vsub.f32 %v1789_v23, %v764_v2 }
 0x498   :  { %821 = vadd.xlane.f32.xlu0 %v1175_v6  ;;  %v758_v7 = vpop.xlane.xlu0 %757 }
 0x499   :  { %v1177_v55 = vpop.eup %1176  ;;  %1186 = vpow2.f32 %v809_v5  ;;  %v811_v60 = vmul.f32 1.442695, %v1861_v9  ;;  %v1865_v58 = vsub.f32 %v1793_v11, %v758_v7 }
 0x49a   :  { %823 = vadd.xlane.f32.xlu1 %v1177_v55  ;;  %v760_v44 = vpop.xlane.xlu1 %759 }
 0x49b   :  { %v1179_v56 = vpop.eup %1178  ;;  %1188 = vpow2.f32 %v811_v60  ;;  %v805_v51 = vmul.f32 1.442695, %v1865_v58  ;;  %v1869_v63 = vsub.f32 %v1799_v12, %v760_v44 }
 0x49c   :  { %833 = vadd.xlane.f32.xlu0 %v1179_v56 }
 0x49d   :  { %v1181_v41 = vpop.eup %1180  ;;  %1190 = vpow2.f32 %v805_v51  ;;  %v807_v57 = vmul.f32 1.442695, %v1869_v63  ;;  %v766_v61 = vpop.xlane.xlu0 %765 }
 0x49e   :  { %v1873_v33 = vsub.f32 %v1808_v3, %v766_v61  ;;  %835 = vadd.xlane.f32.xlu1 %v1181_v41 }
 0x49f   :  { %v1183_v20 = vpop.eup %1182  ;;  %1192 = vpow2.f32 %v807_v57  ;;  %v768_v23 = vpop.xlane.xlu1 %767 }
 0x4a0   :  { %v813_v1 = vmul.f32 1.442695, %v1873_v33  ;;  %v1877_v59 = vsub.f32 %v1813_v18, %v768_v23  ;;  %829 = vadd.xlane.f32.xlu0 %v1183_v20 }
 0x4a1   :  { %v1185_v11 = vpop.eup %1184  ;;  %v770_v15 = vpop.xlane.xlu0 %769 }
 0x4a2   :  { %1194 = vpow2.f32 %v813_v1  ;;  %v815_v24 = vmul.f32 1.442695, %v1877_v59  ;;  %v1881_v62 = vsub.f32 %v1817_v28, %v770_v15  ;;  %831 = vadd.xlane.f32.xlu1 %v1185_v11 }
 0x4a3   :  { %v1187_v10 = vpop.eup %1186  ;;  %v772_v12 = vpop.xlane.xlu1 %771 }
 0x4a4   :  { %1196 = vpow2.f32 %v815_v24  ;;  %v817_v17 = vmul.f32 1.442695, %v1881_v62  ;;  %v1885_v47 = vsub.f32 %v1821_v40, %v772_v12  ;;  %841 = vadd.xlane.f32.xlu0 %v1187_v10 }
 0x4a5   :  { %v1189_v22 = vpop.eup %1188 }
 0x4a6   :  { %1198 = vpow2.f32 %v817_v17  ;;  %v819_v25 = vmul.f32 1.442695, %v1885_v47  ;;  %843 = vadd.xlane.f32.xlu1 %v1189_v22 }
 0x4a7   :  { %v1191_v8 = vpop.eup %1190 }
 0x4a8   :  { %1200 = vpow2.f32 %v819_v25  ;;  %837 = vadd.xlane.f32.xlu0 %v1191_v8 }
 0x4a9   :  { %v1193_v3 = vpop.eup %1192 }
 0x4aa   :  { %839 = vadd.xlane.f32.xlu1 %v1193_v3 }
 0x4ac   :  { %v1195_v48 = vpop.eup %1194 }
 0x4ad   :  { %845 = vadd.xlane.f32.xlu0 %v1195_v48 }
 0x4ae   :  { %v1197_v18 = vpop.eup %1196 }
 0x4af   :  { %847 = vadd.xlane.f32.xlu1 %v1197_v18 }
 0x4b0   :  { %v1199_v28 = vpop.eup %1198 }
 0x4b1   :  { %849 = vadd.xlane.f32.xlu0 %v1199_v28 }
 0x4b2   :  { %v1201_v29 = vpop.eup %1200 }
 0x4b3   :  { %851 = vadd.xlane.f32.xlu1 %v1201_v29 }
 0x521   :  { %v826_v40 = vpop.xlane.xlu0 %825 }
 0x522   :  { %1202 = vlog2.f32 %v826_v40 }
 0x523   :  { %v828_v45 = vpop.xlane.xlu1 %827 }
 0x524   :  { %1204 = vlog2.f32 %v828_v45 }
 0x525   :  { %v822_v50 = vpop.xlane.xlu0 %821 }
 0x526   :  { %1206 = vlog2.f32 %v822_v50 }
 0x527   :  { %v824_v32 = vpop.xlane.xlu1 %823 }
 0x528   :  { %1208 = vlog2.f32 %v824_v32 }
 0x529   :  { %v834_v38 = vpop.xlane.xlu0 %833 }
 0x52a   :  { %1210 = vlog2.f32 %v834_v38 }
 0x52b   :  { %v836_v19 = vpop.xlane.xlu1 %835 }
 0x52c   :  { %v1203_v49 = vpop.eup %1202  ;;  %1212 = vlog2.f32 %v836_v19 }
 0x52d   :  { %v858_v36 = vmul.f32 0.6931472, %v1203_v49  ;;  %v830_v30 = vpop.xlane.xlu0 %829 }
 0x52e   :  { %v1205_v43 = vpop.eup %1204  ;;  %1214 = vlog2.f32 %v830_v30 }
 0x52f   :  { %v887_v16 = vsub.f32 %v1825_v35, %v858_v36  ;;  %v860_v37 = vmul.f32 0.6931472, %v1205_v43  ;;  %v832_v34 = vpop.xlane.xlu1 %831 }
 0x530   :  { %v1207_v14 = vpop.eup %1206  ;;  %1216 = vlog2.f32 %v832_v34 }
 0x531   :  { %903 = vst [vmem:[%s1956_s4 + $0x10] sm:$0xff] %v887_v16  ;;  %v888_v31 = vsub.f32 %v1829_v26, %v860_v37  ;;  %v854_v21 = vmul.f32 0.6931472, %v1207_v14  ;;  %v842_v4 = vpop.xlane.xlu0 %841 }
 0x532   :  { %v1209_v39 = vpop.eup %1208  ;;  %1218 = vlog2.f32 %v842_v4 }
 0x533   :  { %904 = vst [vmem:[%s1956_s4 + $0x18] sm:$0xff] %v888_v31  ;;  %v885_v35 = vsub.f32 %v1833_v42, %v854_v21  ;;  %v856_v53 = vmul.f32 0.6931472, %v1209_v39  ;;  %v844_v2 = vpop.xlane.xlu1 %843 }
 0x534   :  { %v1211_v6 = vpop.eup %1210  ;;  %1220 = vlog2.f32 %v844_v2 }
 0x535   :  { %901 = vst [vmem:[%s1956_s4] sm:$0xff] %v885_v35  ;;  %v886_v26 = vsub.f32 %v1837_v54, %v856_v53  ;;  %v866_v5 = vmul.f32 0.6931472, %v1211_v6  ;;  %v838_v7 = vpop.xlane.xlu0 %837 }
 0x536   :  { %v1213_v55 = vpop.eup %1212  ;;  %1222 = vlog2.f32 %v838_v7 }
 0x537   :  { %902 = vst [vmem:[%s1956_s4 + $0x8] sm:$0xff] %v886_v26  ;;  %v891_v42 = vsub.f32 %v1841_v27, %v866_v5  ;;  %v868_v60 = vmul.f32 0.6931472, %v1213_v55  ;;  %v840_v44 = vpop.xlane.xlu1 %839 }
 0x538   :  { %v1215_v56 = vpop.eup %1214  ;;  %1224 = vlog2.f32 %v840_v44 }
 0x539   :  { %907 = vst [vmem:[%s1956_s4 + $0x30] sm:$0xff] %v891_v42  ;;  %v892_v54 = vsub.f32 %v1845_v13, %v868_v60  ;;  %v862_v51 = vmul.f32 0.6931472, %v1215_v56 }
 0x53a   :  { %v1217_v41 = vpop.eup %1216  ;;  %v846_v57 = vpop.xlane.xlu0 %845 }
 0x53b   :  { %908 = vst [vmem:[%s1956_s4 + $0x38] sm:$0xff] %v892_v54  ;;  %v889_v61 = vsub.f32 %v1849_v52, %v862_v51  ;;  %v864_v27 = vmul.f32 0.6931472, %v1217_v41  ;;  %1226 = vlog2.f32 %v846_v57 }
 0x53c   :  { %v1219_v20 = vpop.eup %1218  ;;  %v848_v23 = vpop.xlane.xlu1 %847 }
 0x53d   :  { %905 = vst [vmem:[%s1956_s4 + $0x20] sm:$0xff] %v889_v61  ;;  %v890_v1 = vsub.f32 %v1853_v46, %v864_v27  ;;  %v874_v13 = vmul.f32 0.6931472, %v1219_v20  ;;  %1228 = vlog2.f32 %v848_v23 }
 0x53e   :  { %v1221_v11 = vpop.eup %1220  ;;  %v850_v15 = vpop.xlane.xlu0 %849 }
 0x53f   :  { %906 = vst [vmem:[%s1956_s4 + $0x28] sm:$0xff] %v890_v1  ;;  %v895_v52 = vsub.f32 %v1857_v0, %v874_v13  ;;  %v876_v24 = vmul.f32 0.6931472, %v1221_v11  ;;  %1230 = vlog2.f32 %v850_v15 }
 0x540   :  { %v1223_v10 = vpop.eup %1222  ;;  %v852_v12 = vpop.xlane.xlu1 %851 }
 0x541   :  { %911 = vst [vmem:[%s1956_s4 + $0x50] sm:$0xff] %v895_v52  ;;  %v896_v46 = vsub.f32 %v1861_v9, %v876_v24  ;;  %v870_v17 = vmul.f32 0.6931472, %v1223_v10  ;;  %1232 = vlog2.f32 %v852_v12 }
 0x542   :  { %v1225_v22 = vpop.eup %1224 }
 0x543   :  { %912 = vst [vmem:[%s1956_s4 + $0x58] sm:$0xff] %v896_v46  ;;  %v893_v25 = vsub.f32 %v1865_v58, %v870_v17  ;;  %v872_v0 = vmul.f32 0.6931472, %v1225_v22 }
 0x545   :  { %v1227_v8 = vpop.eup %1226  ;;  %909 = vst [vmem:[%s1956_s4 + $0x40] sm:$0xff] %v893_v25  ;;  %v894_v3 = vsub.f32 %v1869_v63, %v872_v0 }
 0x546   :  { %v878_v48 = vmul.f32 0.6931472, %v1227_v8 }
 0x547   :  { %v1229_v18 = vpop.eup %1228  ;;  %910 = vst [vmem:[%s1956_s4 + $0x48] sm:$0xff] %v894_v3 }
 0x548   :  { %v897_v9 = vsub.f32 %v1873_v33, %v878_v48  ;;  %v880_v28 = vmul.f32 0.6931472, %v1229_v18 }
 0x549   :  { %v1231_v29 = vpop.eup %1230 }
 0x54a   :  { %913 = vst [vmem:[%s1956_s4 + $0x60] sm:$0xff] %v897_v9  ;;  %v898_v58 = vsub.f32 %v1877_v59, %v880_v28  ;;  %v882_v40 = vmul.f32 0.6931472, %v1231_v29 }
 0x54b   :  { %v1233_v45 = vpop.eup %1232 }
 0x54c   :  { %914 = vst [vmem:[%s1956_s4 + $0x68] sm:$0xff] %v898_v58  ;;  %v899_v63 = vsub.f32 %v1881_v62, %v882_v40  ;;  %v884_v50 = vmul.f32 0.6931472, %v1233_v45 }
 0x54e   :  { %915 = vst [vmem:[%s1956_s4 + $0x70] sm:$0xff] %v899_v63  ;;  %v900_v33 = vsub.f32 %v1885_v47, %v884_v50 }
 0x550   :  { %916 = vst [vmem:[%s1956_s4 + $0x78] sm:$0xff] %v900_v33 }

</bundles_post_ra>
